<compile_context>
chip_gen: v7x
topology: tpu7x:2x2x1
jax: 0.10.0
libtpu: 0.0.40
codegen_flags: <defaults>
</compile_context>

<pallas_src>
import functools

import jax
import jax.numpy as jnp
import numpy as np
from jax.experimental import pallas as pl
from jax.experimental.pallas import tpu as pltpu


def _round_up(n, m):
    return ((n + m - 1) // m) * m


def _choose_block_b(B):
    # Multiples of the MXU M dimension (128) for large batches so grid > 1 and
    # both v7x TensorCores get work; tiny batches just round up to a sublane
    # multiple of 8.
    if B >= 2048:
        return 512
    if B >= 512:
        return 256
    if B >= 128:
        return 128
    return _round_up(max(B, 1), 8)


def _mlp_kernel(x_ref, w1_ref, b1_ref, w2_ref, b2_ref, o_ref):
    # Fused: (x @ W1 + b1) -> ReLU -> (@ W2 + b2), all VMEM-resident.
    # Matmul operands are bf16 (MXU), accumulation + bias/ReLU are f32 (VPU).
    h = jnp.dot(x_ref[...], w1_ref[...], preferred_element_type=jnp.float32)
    h = jnp.maximum(h + b1_ref[...], 0.0)
    y = jnp.dot(h.astype(w2_ref.dtype), w2_ref[...],
                preferred_element_type=jnp.float32)
    o_ref[...] = (y + b2_ref[...]).astype(o_ref.dtype)


@functools.partial(jax.jit, static_argnames=("block_b", "compute_dtype"))
def train_cem_forward(x, w1, b1, w2, b2, *, block_b=None,
                      compute_dtype=jnp.bfloat16):
    """Pallas forward for train_CEM.

    x:  [B, obs]            (float32)
    w1: [obs, hidden]       b1: [1, hidden]
    w2: [hidden, n_actions] b2: [1, n_actions]
    Returns [B, n_actions] float32.
    """
    B, obs = x.shape
    hidden = w1.shape[1]
    n_actions = w2.shape[1]

    # --- Lane-dense output: pad the second layer's output dim to 128 lanes ---
    n_pad = _round_up(max(n_actions, 1), 128)
    w2p = jnp.zeros((hidden, n_pad), w2.dtype).at[:, :n_actions].set(w2)
    b2p = jnp.zeros((1, n_pad), jnp.float32).at[:, :n_actions].set(
        b2.astype(jnp.float32))

    # --- bf16 operands for the MXU; biases stay f32 ---
    xc = x.astype(compute_dtype)
    w1c = w1.astype(compute_dtype)
    w2c = w2p.astype(compute_dtype)
    b1c = b1.astype(jnp.float32)
    b2c = b2p.astype(jnp.float32)

    # --- Batch tiling (with ragged-batch padding) ---
    if block_b is None:
        block_b = _choose_block_b(B)
    block_b = _round_up(block_b, 8)
    Bp = _round_up(B, block_b)
    if Bp != B:
        xc = jnp.zeros((Bp, obs), xc.dtype).at[:B].set(xc)

    grid = (Bp // block_b,)

    # --- Explicit VMEM budget (conservative for v7x's 64 MiB / 32 MiB scoped) ---
    in_itemsize = jnp.dtype(compute_dtype).itemsize
    est = (
        2 * block_b * obs * in_itemsize                       # double-buffered x tiles
        + 2 * block_b * n_pad * 4                             # double-buffered output tiles
        + 2 * (obs * hidden + hidden * n_pad) * in_itemsize   # resident weights
        + 2 * (hidden + n_pad) * 4                            # resident biases
    )
    vmem_bytes = int(min(max(4 * est, 4 << 20), 32 << 20))

    out = pl.pallas_call(
        _mlp_kernel,
        out_shape=jax.ShapeDtypeStruct((Bp, n_pad), jnp.float32),
        grid_spec=pl.GridSpec(
            grid=grid,
            in_specs=[
                pl.BlockSpec((block_b, obs), lambda i: (i, 0)),   # x tile (pipelined)
                pl.BlockSpec((obs, hidden), lambda i: (0, 0)),    # W1 (resident)
                pl.BlockSpec((1, hidden), lambda i: (0, 0)),      # b1 (resident)
                pl.BlockSpec((hidden, n_pad), lambda i: (0, 0)),  # W2 (resident)
                pl.BlockSpec((1, n_pad), lambda i: (0, 0)),       # b2 (resident)
            ],
            out_specs=pl.BlockSpec((block_b, n_pad), lambda i: (i, 0)),
        ),
        compiler_params=pltpu.CompilerParams(
            dimension_semantics=("parallel",),
            vmem_limit_bytes=vmem_bytes,
        ),
    )(xc, w1c, b1c, w2c, b2c)

    # Strip batch padding and the lane padding added for dense stores
    # (fused into the jitted program, so no extra eager copies).
    return out[:B, :n_actions]


def init_params(key, obs_size, hidden_size, n_actions):
    """Deterministic init mimicking PyTorch nn.Linear default (uniform +/- 1/sqrt(fan_in))."""
    k1, k2, k3, k4 = jax.random.split(key, 4)
    bound1 = 1.0 / np.sqrt(obs_size)
    bound2 = 1.0 / np.sqrt(hidden_size)
    w1 = jax.random.uniform(k1, (obs_size, hidden_size), jnp.float32, -bound1, bound1)
    b1 = jax.random.uniform(k2, (1, hidden_size), jnp.float32, -bound1, bound1)
    w2 = jax.random.uniform(k3, (hidden_size, n_actions), jnp.float32, -bound2, bound2)
    b2 = jax.random.uniform(k4, (1, n_actions), jnp.float32, -bound2, bound2)
    return w1, b1, w2, b2


def _ref_forward_f32(x, w1, b1, w2, b2):
    # Pure-f32 reference (exact PyTorch Sequential math).
    return jnp.maximum(x @ w1 + b1, 0.0) @ w2 + b2


def _ref_forward_bf16(x, w1, b1, w2, b2, compute_dtype=jnp.bfloat16):
    # Reference mirroring the kernel's bf16 operand quantization (f32 accum).
    h = jnp.dot(x.astype(compute_dtype), w1.astype(compute_dtype),
                preferred_element_type=jnp.float32) + b1
    h = jnp.maximum(h, 0.0).astype(compute_dtype)
    return jnp.dot(h, w2.astype(compute_dtype),
                   preferred_element_type=jnp.float32) + b2


if __name__ == "__main__":
    # Small shapes consistent with the module (CartPole-ish CEM agent).
    obs_size, hidden_size, n_actions = 16, 32, 4

    key = jax.random.PRNGKey(0)
    kx, kp, kx2 = jax.random.split(key, 3)
    w1, b1, w2, b2 = init_params(kp, obs_size, hidden_size, n_actions)

    # 1) Small batch (few population members / one rollout step).
    x_small = jax.random.normal(kx, (8, obs_size), dtype=jnp.float32)
    out_small = jax.block_until_ready(train_cem_forward(x_small, w1, b1, w2, b2))
    assert out_small.shape == (8, n_actions)
    np.testing.assert_allclose(
        np.asarray(out_small),
        np.asarray(_ref_forward_bf16(x_small, w1, b1, w2, b2)),
        rtol=1e-4, atol=1e-4)
    np.testing.assert_allclose(
        np.asarray(out_small),
        np.asarray(_ref_forward_f32(x_small, w1, b1, w2, b2)),
        rtol=5e-2, atol=5e-2)

    # 2) Larger batched call (many population members fused into one launch):
    #    grid > 1 so the pipeline overlaps x-tile DMA with compute and the
    #    parallel batch axis can span both v7x TensorCores; 1000 rows also
    #    exercises the ragged-batch padding path.
    x_big = jax.random.normal(kx2, (1000, obs_size), dtype=jnp.float32)
    out_big = jax.block_until_ready(train_cem_forward(x_big, w1, b1, w2, b2))
    assert out_big.shape == (1000, n_actions)
    np.testing.assert_allclose(
        np.asarray(out_big),
        np.asarray(_ref_forward_bf16(x_big, w1, b1, w2, b2)),
        rtol=1e-4, atol=1e-4)
    np.testing.assert_allclose(
        np.asarray(out_big),
        np.asarray(_ref_forward_f32(x_big, w1, b1, w2, b2)),
        rtol=5e-2, atol=5e-2)

    # TODO(synk): the CEM training loop (elite selection, CrossEntropyLoss,
    # Adam update, TensorBoard logging) is host-side control logic, not part
    # of the nn.Module forward; only the forward pass is implemented here.
    print("KERNEL_OK")
</pallas_src>

<mosaic_0001>
module attributes {stable_mosaic.version = 11 : i64} {
  func.func @_mlp_kernel(%arg0: i32, %arg1: memref<8x16xbf16, #tpu.memory_space<vmem>>, %arg2: memref<16x32xbf16, #tpu.memory_space<vmem>>, %arg3: memref<1x32xf32, #tpu.memory_space<vmem>>, %arg4: memref<32x128xbf16, #tpu.memory_space<vmem>>, %arg5: memref<1x128xf32, #tpu.memory_space<vmem>>, %arg6: memref<8x128xf32, #tpu.memory_space<vmem>>) attributes {dimension_semantics = [#tpu.dimension_semantics<parallel>], iteration_bounds = array<i64: 1>, scalar_prefetch = 0 : i64, scratch_operands = 0 : i64, tpu.core_type = #tpu.core_type<tc>, window_params = [{transform_indices = @transform_0, window_bounds = array<i64: 8, 16>}, {pipeline_mode = #tpu.pipeline_mode<synchronous>, transform_indices = @transform_1, window_bounds = array<i64: 16, 32>}, {pipeline_mode = #tpu.pipeline_mode<synchronous>, transform_indices = @transform_2, window_bounds = array<i64: 1, 32>}, {pipeline_mode = #tpu.pipeline_mode<synchronous>, transform_indices = @transform_3, window_bounds = array<i64: 32, 128>}, {pipeline_mode = #tpu.pipeline_mode<synchronous>, transform_indices = @transform_4, window_bounds = array<i64: 1, 128>}, {transform_indices = @transform_5, window_bounds = array<i64: 8, 128>}]} {
    %c0 = arith.constant 0 : index
    %c0_0 = arith.constant 0 : index
    %0 = vector.load %arg1[%c0, %c0_0] : memref<8x16xbf16, #tpu.memory_space<vmem>>, vector<8x16xbf16>
    %c0_1 = arith.constant 0 : index
    %c0_2 = arith.constant 0 : index
    %1 = vector.load %arg2[%c0_1, %c0_2] : memref<16x32xbf16, #tpu.memory_space<vmem>>, vector<16x32xbf16>
    %cst = arith.constant dense<0.000000e+00> : vector<8x32xf32>
    %2 = tpu.matmul %0, %1, %cst {dimension_numbers = #tpu.dot_dimension_numbers<[1], [0], [0], [1], [0, 0, 1, 1], [], []>} : vector<8x16xbf16>, vector<16x32xbf16>, vector<8x32xf32> -> vector<8x32xf32>
    %c0_3 = arith.constant 0 : index
    %c0_4 = arith.constant 0 : index
    %3 = vector.load %arg3[%c0_3, %c0_4] : memref<1x32xf32, #tpu.memory_space<vmem>>, vector<1x32xf32>
    %4 = vector.broadcast %3 : vector<1x32xf32> to vector<8x32xf32>
    %5 = arith.addf %2, %4 : vector<8x32xf32>
    %cst_5 = arith.constant 0.000000e+00 : f32
    %6 = vector.broadcast %cst_5 : f32 to vector<8x32xf32>
    %7 = arith.maximumf %5, %6 : vector<8x32xf32>
    %8 = arith.truncf %7 : vector<8x32xf32> to vector<8x32xbf16>
    %c0_6 = arith.constant 0 : index
    %c0_7 = arith.constant 0 : index
    %9 = vector.load %arg4[%c0_6, %c0_7] : memref<32x128xbf16, #tpu.memory_space<vmem>>, vector<32x128xbf16>
    %cst_8 = arith.constant dense<0.000000e+00> : vector<8x128xf32>
    %10 = tpu.matmul %8, %9, %cst_8 {dimension_numbers = #tpu.dot_dimension_numbers<[1], [0], [0], [1], [0, 0, 1, 1], [], []>} : vector<8x32xbf16>, vector<32x128xbf16>, vector<8x128xf32> -> vector<8x128xf32>
    %c0_9 = arith.constant 0 : index
    %c0_10 = arith.constant 0 : index
    %11 = vector.load %arg5[%c0_9, %c0_10] : memref<1x128xf32, #tpu.memory_space<vmem>>, vector<1x128xf32>
    %12 = vector.broadcast %11 : vector<1x128xf32> to vector<8x128xf32>
    %13 = arith.addf %10, %12 : vector<8x128xf32>
    %c0_11 = arith.constant 0 : index
    %c0_12 = arith.constant 0 : index
    %14 = vector.load %arg6[%c0_11, %c0_12] : memref<8x128xf32, #tpu.memory_space<vmem>>, vector<8x128xf32>
    tpu.vector_store %arg6[%c0_11, %c0_12], %13 {strides = array<i32>} : memref<8x128xf32, #tpu.memory_space<vmem>>, vector<8x128xf32>,
    return
  }
  func.func @transform_0(%arg0: i32) -> (i32, i32) {
    %c0_i32 = arith.constant 0 : i32
    %c0_i32_0 = arith.constant 0 : i32
    return %arg0, %c0_i32 : i32, i32
  }
  func.func @transform_1(%arg0: i32) -> (i32, i32) {
    %c0_i32 = arith.constant 0 : i32
    %c0_i32_0 = arith.constant 0 : i32
    %c0_i32_1 = arith.constant 0 : i32
    return %c0_i32, %c0_i32_0 : i32, i32
  }
  func.func @transform_2(%arg0: i32) -> (i32, i32) {
    %c0_i32 = arith.constant 0 : i32
    %c0_i32_0 = arith.constant 0 : i32
    %c0_i32_1 = arith.constant 0 : i32
    return %c0_i32, %c0_i32_0 : i32, i32
  }
  func.func @transform_3(%arg0: i32) -> (i32, i32) {
    %c0_i32 = arith.constant 0 : i32
    %c0_i32_0 = arith.constant 0 : i32
    %c0_i32_1 = arith.constant 0 : i32
    return %c0_i32, %c0_i32_0 : i32, i32
  }
  func.func @transform_4(%arg0: i32) -> (i32, i32) {
    %c0_i32 = arith.constant 0 : i32
    %c0_i32_0 = arith.constant 0 : i32
    %c0_i32_1 = arith.constant 0 : i32
    return %c0_i32, %c0_i32_0 : i32, i32
  }
  func.func @transform_5(%arg0: i32) -> (i32, i32) {
    %c0_i32 = arith.constant 0 : i32
    %c0_i32_0 = arith.constant 0 : i32
    return %arg0, %c0_i32 : i32, i32
  }
}

</mosaic_0001>

<bundles_post_ra>
// kernel: train_cem_forward.1
= control target key start
LH: loop header
LB: loop body
LE: loop exit
PB: predicated region body
PF: predicated region fallthrough
CT: control target
= control target key end

     0   :  { %v186_v0 = vmov 0.0   ;;  %vm187_vm0 = vmmov 0   ;;  %vm37_vm1 = vcmask 130048   ;;  %vm106_vm2 = vcmask 261120   ;;  %s239_s1 = inlined_call_operand.vmem [shape: bf16[16,32], index: 1, kind: input, shape index: {}]   ;;  %s240_s0 = inlined_call_operand.vmem [shape: bf16[8,16], index: 0, kind: input, shape index: {}]   ;;  %s241_s3 = inlined_call_operand.vmem [shape: bf16[32,128], index: 3, kind: input, shape index: {}]   ;;  %s242_s2 = inlined_call_operand.vmem [shape: f32[1,32], index: 2, kind: input, shape index: {}]   ;;  %s243_s4 = inlined_call_operand.vmem [shape: f32[1,128], index: 4, kind: input, shape index: {}]   ;;  %s244_s5 = inlined_call_operand.vmem [shape: f32[8,128], index: 5, kind: output, shape index: {}]  }
   0x1   :  { %167 = vmatprep.subr.bf16.mxu0 %v186_v0  ;;  %v183_v1 = vld [vmem:[%s239_s1] sm:$0xff]   ;;  %169 = vmatprep.mubr.msk.bf16.mxu0 %vm187_vm0, %v186_v0  ;;  %v185_v4 = vld [vmem:[%s241_s3 + $0x8] sm:$0xff]  }
   0x2   :  { %173 = vmatprep.subr.bf16.mxu1 %v186_v0  ;;  %177 = vmatprep.mubr.msk.bf16.mxu1 %vm187_vm0, %v186_v0  ;;  %v21_v2 = vld [vmem:[%s240_s0] sm:$0xf] }
   0x3   :  { %168 = vmatpush3.bf16.msra.mxu0 %v183_v1  ;;  %v184_v3 = vld [vmem:[%s241_s3] sm:$0xff]  }
   0x4   :  { %174 = vmatpush3.bf16.msra.mxu1 %v184_v3  ;;  %v155_v5 = vld [vmem:[%s242_s2] ss:$0 sm:$0xff] }
   0x5   :  { %175 = vmatprep.subr.bf16.mxu1 %v186_v0  ;;  %v158_v13 = vld [vmem:[%s243_s4] ss:$0 sm:$0xff] }
   0x6   :  { %170 = vmatmul.mubr.msk.bf16.vlgmr.msra.gmra.mrb[0].mxu0 %vm37_vm1, %v21_v2 }
   0x8   :  { %176 = vmatpush3.bf16.msra.mxu1 %v185_v4 }
  0xd9   :  { %v75_v6 = vpop.f32.mrb[0].mxu0 }
  0xda   :  { %v76_v7 = vadd.f32 %v155_v5, %v75_v6  ;;  %v171_v8 = vpop.f32.mrb[1].mxu0 }
  0xdb   :  { %v78_v9 = vpop.f32.mrb[2].mxu0 }
  0xdc   :  { %v81_v10 = vmax.f32 %v76_v7, 0.0  ;;  %v172_v11 = vpop.f32.mrb[3].mxu0 }
  0xde   :  { %v82_v12 = vpack.c.bf16 %v81_v10, %v81_v10 }
  0xe0   :  { %178 = vmatmul.mubr.msk.bf16.vlgmr.msra.gmra.mrb[0].mxu1 %vm106_vm2, %v82_v12 }
 0x1b3   :  { %v144_v14 = vpop.f32.mrb[0].mxu1 }
 0x1b4   :  { %v145_v15 = vadd.f32 %v158_v13, %v144_v14  ;;  %v179_v16 = vpop.f32.mrb[1].mxu1 }
 0x1b5   :  { %v147_v17 = vpop.f32.mrb[2].mxu1 }
 0x1b6   :  { %150 = vst [vmem:[%s244_s5] sm:$0xff] %v145_v15  ;;  %v180_v18 = vpop.f32.mrb[3].mxu1 }

</bundles_post_ra>
